<compile_context>
chip_gen: v7x
topology: tpu7x:2x2x1
jax: 0.10.0
libtpu: 0.0.40
codegen_flags: <defaults>
</compile_context>

<pallas_src>
import functools

import jax
import jax.numpy as jnp
from jax.experimental import pallas as pl
from jax.experimental.pallas import tpu as pltpu


# ----------------------------------------------------------------------------
# In-kernel helper: GraphAttentionLayer attention core, batched over the
# leading dim.  h: [G, N, D], g: [N, N]  ->  [G, N, D]
#   torch: s = (h @ h^T) * g ; s[s == 0] = -1e16 ; softmax(s) @ h
# ----------------------------------------------------------------------------
def _batched_attention(h, g):
    s = jnp.einsum("gnd,gmd->gnm", h, h,
                   preferred_element_type=jnp.float32)        # [G, N, N]
    s = s * g[None]
    s = jnp.where(s == 0.0, jnp.float32(-1e16), s)            # exact-zero masking
    m = jnp.max(s, axis=-1, keepdims=True)
    e = jnp.exp(s - m)
    attn = e / jnp.sum(e, axis=-1, keepdims=True)             # exact softmax
    return jnp.einsum("gnm,gmd->gnd", attn, h,
                      preferred_element_type=jnp.float32)     # [G, N, D]


# ----------------------------------------------------------------------------
# Kernel body: one (batch-group b, time-step t) grid point.
# ----------------------------------------------------------------------------
def _gatnet2_kernel(x_ref, g_ref, wh_ref, bh_ref, wo_ref, bo_ref, wf_ref, bf_ref,
                    o_ref, acc_ref, *, Bt, N, C, H, Dhid, Dout):
    # Blocks (T dim squeezed where applicable):
    #   x_ref : [Bt, N, C]          g_ref : [N, N]
    #   wh_ref: [H, C, Dhid]        bh_ref: [H, 1, Dhid]
    #   wo_ref: [H, Dhid, Dout]     bo_ref: [1, 1, Dout]
    #   wf_ref: [Dout, Dout]        bf_ref: [1, 1, Dout]
    #   o_ref : [Bt, N, Dout]       acc_ref: [Bt*N, Dout] f32 (carried over t)
    t = pl.program_id(1)

    @pl.when(t == 0)
    def _():
        acc_ref[...] = jnp.zeros_like(acc_ref)

    g = g_ref[...].astype(jnp.float32)

    # ---- all-head projection for this time step: one head-batched matmul.
    x2 = x_ref[...].astype(jnp.float32).reshape(Bt * N, C)
    xb = jnp.broadcast_to(x2[None], (H, Bt * N, C))
    h = jnp.einsum("hnc,hcd->hnd", xb, wh_ref[...].astype(jnp.float32),
                   preferred_element_type=jnp.float32)        # [H, Bt*N, Dhid]

    # ---- per-(head, batch-item) attention, batched over G = H*Bt.
    head_out = _batched_attention(h.reshape(H * Bt, N, Dhid), g)
    head_out = head_out.reshape(H, Bt * N, Dhid)

    # per-head bias + ReLU (== ReLU after the head concat in torch), then fold
    # the head concat into a per-head contraction with the out_att weight.
    r = jnp.maximum(head_out + bh_ref[...].astype(jnp.float32), 0.0)
    z = jnp.einsum("hnd,hdo->hno", r, wo_ref[...].astype(jnp.float32),
                   preferred_element_type=jnp.float32)        # [H, Bt*N, Dout]
    h_o = jnp.sum(z, axis=0).reshape(Bt, N, Dout)             # == concat @ W_out_att

    # ---- out_att attention of this time step (batched over Bt) + bias + ReLU.
    out_t = _batched_attention(h_o, g) + bo_ref[...].astype(jnp.float32)
    out_t = jnp.maximum(out_t, 0.0)                           # [Bt, N, Dout]

    # ---- time-step concat folded into the final projection:
    #      acc += out_t @ W_out[t]   (== concat_t(out_t) @ W_out)
    acc_ref[...] += jnp.dot(out_t.reshape(Bt * N, Dout),
                            wf_ref[...].astype(jnp.float32),
                            preferred_element_type=jnp.float32)

    # ---- final "out" GraphAttentionLayer on the last time step (no ReLU).
    @pl.when(t == pl.num_programs(1) - 1)
    def _():
        h_f = acc_ref[...].reshape(Bt, N, Dout)
        res = _batched_attention(h_f, g) + bf_ref[...].astype(jnp.float32)
        o_ref[...] = res.astype(o_ref.dtype)


# ----------------------------------------------------------------------------
# Batch grouping: feed the MXU >= ~256 rows per step when B allows, while
# keeping at least 2 grid steps along the parallel axis (v7x has 2 TCs).
# ----------------------------------------------------------------------------
def _pick_batch_group(B, N):
    divisors = [d for d in range(1, B + 1) if B % d == 0]
    cands = [d for d in divisors if B // d >= 2] or divisors
    big_enough = [d for d in cands if d * N >= 256]
    if big_enough:
        return min(big_enough)
    return max(cands)


# ----------------------------------------------------------------------------
# Wrapper: single pallas_call over (batch-group, time-step).
# ----------------------------------------------------------------------------
def gatnet2_forward(flow_x, graph_batched, params, block_batch=None):
    """flow_x: [B, N, T, C]; graph_batched: [G0, N, N] (torch uses graph[0])."""
    graph = graph_batched[0]
    B, N, T, C = flow_x.shape

    wh = params["W_heads"]      # [T, H, C, Dhid]
    bh = params["b_heads"]      # [T, H, 1, Dhid]
    wo = params["W_out_att"]    # [T, H, Dhid, Dout]
    bo = params["b_out_att"]    # [T, 1, 1, Dout]
    wf = params["W_out"]        # [T, Dout, Dout]
    bf = params["b_out"]        # [1, 1, Dout]
    H = wh.shape[1]
    Dhid = wh.shape[-1]
    Dout = wo.shape[-1]

    Bt = block_batch or _pick_batch_group(B, N)
    assert B % Bt == 0

    # Time-major activation layout so each (b, t) grid step DMAs a contiguous
    # [Bt, N, C] slice.  (Ideally the producer already emits [B, T, N, C] and
    # this transpose disappears entirely.)
    x = jnp.transpose(flow_x, (0, 2, 1, 3))                   # [B, T, N, C]

    kernel = functools.partial(_gatnet2_kernel, Bt=Bt, N=N, C=C, H=H,
                               Dhid=Dhid, Dout=Dout)

    # NOTE: for large N, raise vmem_limit_bytes and tile the [N, N] attention
    # (flash-style) to stay inside v7x's 64 MiB VMEM; unnecessary at these sizes.
    out = pl.pallas_call(
        kernel,
        out_shape=jax.ShapeDtypeStruct((B, N, Dout), flow_x.dtype),
        grid_spec=pltpu.PrefetchScalarGridSpec(
            num_scalar_prefetch=0,
            grid=(B // Bt, T),                                # (batch groups, time)
            in_specs=[
                pl.BlockSpec((Bt, None, N, C), lambda b, t: (b, t, 0, 0)),      # x_t
                pl.BlockSpec((N, N), lambda b, t: (0, 0)),                      # graph
                pl.BlockSpec((None, H, C, Dhid), lambda b, t: (t, 0, 0, 0)),    # head W
                pl.BlockSpec((None, H, 1, Dhid), lambda b, t: (t, 0, 0, 0)),    # head b
                pl.BlockSpec((None, H, Dhid, Dout), lambda b, t: (t, 0, 0, 0)), # out_att W
                pl.BlockSpec((None, 1, 1, Dout), lambda b, t: (t, 0, 0, 0)),    # out_att b
                pl.BlockSpec((None, Dout, Dout), lambda b, t: (t, 0, 0)),       # final W_t
                pl.BlockSpec((1, 1, Dout), lambda b, t: (0, 0, 0)),             # final b
            ],
            out_specs=pl.BlockSpec((Bt, N, Dout), lambda b, t: (b, 0, 0)),
            scratch_shapes=[pltpu.VMEM((Bt * N, Dout), jnp.float32)],
        ),
        compiler_params=pltpu.CompilerParams(
            dimension_semantics=("parallel", "arbitrary")),
    )(x, graph, wh, bh, wo, bo, wf, bf)

    return out[:, :, None, :]                                 # [B, N, 1, Dout]


# ----------------------------------------------------------------------------
# Parameter init (normal_, matching torch __init__), packed for the fused
# kernel.  Linear weights are stored as [in, out] (transposed vs nn.Linear).
# ----------------------------------------------------------------------------
def init_params(key, input_dim, hidden_dim, output_dim, n_heads, T):
    ks = jax.random.split(key, 6)
    # Per-head attention layers of each time step: heads in a leading dim.
    W_heads = jax.random.normal(ks[0], (T, n_heads, input_dim, hidden_dim),
                                jnp.float32)
    b_heads = jax.random.normal(ks[1], (T, n_heads, 1, hidden_dim), jnp.float32)
    # out_att: Linear(H*Dhid, Dout) reshaped so the head concat becomes a
    # per-head (Dhid) contraction summed over heads.
    W_out_att = jax.random.normal(
        ks[2], (T, n_heads * hidden_dim, output_dim), jnp.float32
    ).reshape(T, n_heads, hidden_dim, output_dim)
    b_out_att = jax.random.normal(ks[3], (T, 1, 1, output_dim), jnp.float32)
    # Final out layer: Linear(Dout*T, Dout) reshaped so the time concat becomes
    # a per-t accumulation.
    W_out = jax.random.normal(
        ks[4], (output_dim * T, output_dim), jnp.float32
    ).reshape(T, output_dim, output_dim)
    b_out = jax.random.normal(ks[5], (1, 1, output_dim), jnp.float32)

    return {"W_heads": W_heads, "b_heads": b_heads,
            "W_out_att": W_out_att, "b_out_att": b_out_att,
            "W_out": W_out, "b_out": b_out}


# ----------------------------------------------------------------------------
if __name__ == "__main__":
    # Small, forward-consistent shapes.
    B, N, T, C = 2, 8, 3, 4          # batch, nodes, time steps, input channels
    hidden_dim, output_dim, n_heads = 8, 8, 2

    key = jax.random.PRNGKey(0)
    k_flow, k_graph, k_params = jax.random.split(key, 3)

    flow_x = jax.random.normal(k_flow, (B, N, T, C), jnp.float32)
    # Binary adjacency with self-loops; data['graph'] is batched, model takes [0].
    adj = (jax.random.uniform(k_graph, (N, N)) > 0.5).astype(jnp.float32)
    adj = jnp.maximum(adj, jnp.eye(N, dtype=jnp.float32))
    graph_batched = adj[None, :, :]                           # [1, N, N]

    params = init_params(k_params, C, hidden_dim, output_dim, n_heads, T)

    out = gatnet2_forward(flow_x, graph_batched, params)
    out = jax.block_until_ready(out)
    assert out.shape == (B, N, 1, output_dim), out.shape
    print("KERNEL_OK")
</pallas_src>

<mosaic_0001>
module attributes {stable_mosaic.version = 11 : i64} {
  func.func @_gatnet2_kernel(%arg0: i32, %arg1: i32, %arg2: memref<1x1x8x4xf32, #tpu.memory_space<vmem>>, %arg3: memref<8x8xf32, #tpu.memory_space<vmem>>, %arg4: memref<1x2x4x8xf32, #tpu.memory_space<vmem>>, %arg5: memref<1x2x1x8xf32, #tpu.memory_space<vmem>>, %arg6: memref<1x2x8x8xf32, #tpu.memory_space<vmem>>, %arg7: memref<1x1x1x8xf32, #tpu.memory_space<vmem>>, %arg8: memref<1x8x8xf32, #tpu.memory_space<vmem>>, %arg9: memref<1x1x8xf32, #tpu.memory_space<vmem>>, %arg10: memref<1x8x8xf32, #tpu.memory_space<vmem>>, %arg11: memref<8x8xf32, #tpu.memory_space<vmem>>) attributes {dimension_semantics = [#tpu.dimension_semantics<parallel>, #tpu.dimension_semantics<arbitrary>], iteration_bounds = array<i64: 2, 3>, scalar_prefetch = 0 : i64, scratch_operands = 1 : i64, tpu.core_type = #tpu.core_type<tc>, window_params = [{transform_indices = @transform_0, window_bounds = array<i64: 1, 1, 8, 4>}, {pipeline_mode = #tpu.pipeline_mode<synchronous>, transform_indices = @transform_1, window_bounds = array<i64: 8, 8>}, {transform_indices = @transform_2, window_bounds = array<i64: 1, 2, 4, 8>}, {transform_indices = @transform_3, window_bounds = array<i64: 1, 2, 1, 8>}, {transform_indices = @transform_4, window_bounds = array<i64: 1, 2, 8, 8>}, {transform_indices = @transform_5, window_bounds = array<i64: 1, 1, 1, 8>}, {transform_indices = @transform_6, window_bounds = array<i64: 1, 8, 8>}, {pipeline_mode = #tpu.pipeline_mode<synchronous>, transform_indices = @transform_7, window_bounds = array<i64: 1, 1, 8>}, {transform_indices = @transform_8, window_bounds = array<i64: 1, 8, 8>}]} {
    %c0_i32 = arith.constant 0 : i32
    %0 = arith.cmpi eq, %arg1, %c0_i32 : i32
    %1 = arith.extui %0 : i1 to i32
    %c0_i32_0 = arith.constant 0 : i32
    %2 = arith.cmpi ne, %1, %c0_i32_0 : i32
    scf.if %2 {
      %cst_47 = arith.constant 0.000000e+00 : f32
      %75 = vector.broadcast %cst_47 : f32 to vector<8x8xf32>
      %c0_48 = arith.constant 0 : index
      %c0_49 = arith.constant 0 : index
      %76 = vector.load %arg11[%c0_48, %c0_49] : memref<8x8xf32, #tpu.memory_space<vmem>>, vector<8x8xf32>
      tpu.vector_store %arg11[%c0_48, %c0_49], %75 {strides = array<i32>} : memref<8x8xf32, #tpu.memory_space<vmem>>, vector<8x8xf32>,
    } else {
    }
    %c0 = arith.constant 0 : index
    %c0_1 = arith.constant 0 : index
    %3 = vector.load %arg3[%c0, %c0_1] : memref<8x8xf32, #tpu.memory_space<vmem>>, vector<8x8xf32>
    %c0_2 = arith.constant 0 : index
    %c0_3 = arith.constant 0 : index
    %c0_4 = arith.constant 0 : index
    %c0_5 = arith.constant 0 : index
    %4 = vector.load %arg2[%c0_2, %c0_3, %c0_4, %c0_5] : memref<1x1x8x4xf32, #tpu.memory_space<vmem>>, vector<1x1x8x4xf32>
    %5 = vector.shape_cast %4 : vector<1x1x8x4xf32> to vector<1x8x4xf32>
    %6 = vector.shape_cast %5 : vector<1x8x4xf32> to vector<8x4xf32>
    %7 = vector.shape_cast %6 : vector<8x4xf32> to vector<1x8x4xf32>
    %8 = vector.shape_cast %7 : vector<1x8x4xf32> to vector<1x8x4xf32>
    %9 = vector.broadcast %8 : vector<1x8x4xf32> to vector<2x8x4xf32>
    %c0_6 = arith.constant 0 : index
    %c0_7 = arith.constant 0 : index
    %c0_8 = arith.constant 0 : index
    %c0_9 = arith.constant 0 : index
    %10 = vector.load %arg4[%c0_6, %c0_7, %c0_8, %c0_9] : memref<1x2x4x8xf32, #tpu.memory_space<vmem>>, vector<1x2x4x8xf32>
    %11 = vector.shape_cast %10 : vector<1x2x4x8xf32> to vector<2x4x8xf32>
    "tpu.trace_start"() <{level = 10 : i32, message = "hnc,hcd->hnd"}> : () -> ()
    %cst = arith.constant dense<0.000000e+00> : vector<2x8x8xf32>
    %12 = tpu.matmul %9, %11, %cst {dimension_numbers = #tpu.dot_dimension_numbers<[2], [1], [1], [2], [0, 0, 0, 1, 1, 2], [0], [0]>} : vector<2x8x4xf32>, vector<2x4x8xf32>, vector<2x8x8xf32> -> vector<2x8x8xf32>
    "tpu.trace_stop"() : () -> ()
    "tpu.trace_start"() <{level = 10 : i32, message = "gnd,gmd->gnm"}> : () -> ()
    %cst_10 = arith.constant dense<0.000000e+00> : vector<2x8x8xf32>
    %13 = tpu.matmul %12, %12, %cst_10 {dimension_numbers = #tpu.dot_dimension_numbers<[2], [2], [1], [1], [0, 0, 0, 1, 1, 1], [0], [0]>} : vector<2x8x8xf32>, vector<2x8x8xf32>, vector<2x8x8xf32> -> vector<2x8x8xf32>
    "tpu.trace_stop"() : () -> ()
    %14 = vector.shape_cast %3 : vector<8x8xf32> to vector<1x8x8xf32>
    %15 = vector.broadcast %14 : vector<1x8x8xf32> to vector<2x8x8xf32>
    %16 = arith.mulf %13, %15 : vector<2x8x8xf32>
    %cst_11 = arith.constant 0.000000e+00 : f32
    %17 = vector.broadcast %cst_11 : f32 to vector<2x8x8xf32>
    %18 = arith.cmpf oeq, %16, %17 : vector<2x8x8xf32>
    %cst_12 = arith.constant -1.000000e+16 : f32
    %19 = vector.broadcast %cst_12 : f32 to vector<2x8x8xf32>
    %20 = arith.select %18, %19, %16 : vector<2x8x8xi1>, vector<2x8x8xf32>
    %cst_13 = arith.constant dense<0xFF800000> : vector<2x8xf32>
    %21 = vector.multi_reduction <maximumf>, %20, %cst_13 [2] : vector<2x8x8xf32> to vector<2x8xf32>
    %22 = vector.shape_cast %21 : vector<2x8xf32> to vector<2x8x1xf32>
    %23 = vector.broadcast %22 : vector<2x8x1xf32> to vector<2x8x8xf32>
    %24 = arith.subf %20, %23 : vector<2x8x8xf32>
    %25 = math.exp %24 : vector<2x8x8xf32>
    %cst_14 = arith.constant dense<0.000000e+00> : vector<2x8xf32>
    %26 = vector.multi_reduction <add>, %25, %cst_14 [2] : vector<2x8x8xf32> to vector<2x8xf32>
    %27 = vector.shape_cast %26 : vector<2x8xf32> to vector<2x8x1xf32>
    %28 = vector.broadcast %27 : vector<2x8x1xf32> to vector<2x8x8xf32>
    %29 = arith.divf %25, %28 : vector<2x8x8xf32>
    "tpu.trace_start"() <{level = 10 : i32, message = "gnm,gmd->gnd"}> : () -> ()
    %cst_15 = arith.constant dense<0.000000e+00> : vector<2x8x8xf32>
    %30 = tpu.matmul %29, %12, %cst_15 {dimension_numbers = #tpu.dot_dimension_numbers<[2], [1], [1], [2], [0, 0, 0, 1, 1, 2], [0], [0]>} : vector<2x8x8xf32>, vector<2x8x8xf32>, vector<2x8x8xf32> -> vector<2x8x8xf32>
    "tpu.trace_stop"() : () -> ()
    %c0_16 = arith.constant 0 : index
    %c0_17 = arith.constant 0 : index
    %c0_18 = arith.constant 0 : index
    %c0_19 = arith.constant 0 : index
    %31 = vector.load %arg5[%c0_16, %c0_17, %c0_18, %c0_19] : memref<1x2x1x8xf32, #tpu.memory_space<vmem>>, vector<1x2x1x8xf32>
    %32 = vector.shape_cast %31 : vector<1x2x1x8xf32> to vector<2x1x8xf32>
    %33 = vector.broadcast %32 : vector<2x1x8xf32> to vector<2x8x8xf32>
    %34 = arith.addf %30, %33 : vector<2x8x8xf32>
    %cst_20 = arith.constant 0.000000e+00 : f32
    %35 = vector.broadcast %cst_20 : f32 to vector<2x8x8xf32>
    %36 = arith.maximumf %34, %35 : vector<2x8x8xf32>
    %c0_21 = arith.constant 0 : index
    %c0_22 = arith.constant 0 : index
    %c0_23 = arith.constant 0 : index
    %c0_24 = arith.constant 0 : index
    %37 = vector.load %arg6[%c0_21, %c0_22, %c0_23, %c0_24] : memref<1x2x8x8xf32, #tpu.memory_space<vmem>>, vector<1x2x8x8xf32>
    %38 = vector.shape_cast %37 : vector<1x2x8x8xf32> to vector<2x8x8xf32>
    "tpu.trace_start"() <{level = 10 : i32, message = "hnd,hdo->hno"}> : () -> ()
    %cst_25 = arith.constant dense<0.000000e+00> : vector<2x8x8xf32>
    %39 = tpu.matmul %36, %38, %cst_25 {dimension_numbers = #tpu.dot_dimension_numbers<[2], [1], [1], [2], [0, 0, 0, 1, 1, 2], [0], [0]>} : vector<2x8x8xf32>, vector<2x8x8xf32>, vector<2x8x8xf32> -> vector<2x8x8xf32>
    "tpu.trace_stop"() : () -> ()
    %cst_26 = arith.constant dense<0.000000e+00> : vector<8x8xf32>
    %40 = vector.multi_reduction <add>, %39, %cst_26 [0] : vector<2x8x8xf32> to vector<8x8xf32>
    %41 = vector.shape_cast %40 : vector<8x8xf32> to vector<1x8x8xf32>
    "tpu.trace_start"() <{level = 10 : i32, message = "gnd,gmd->gnm"}> : () -> ()
    %cst_27 = arith.constant dense<0.000000e+00> : vector<1x8x8xf32>
    %42 = tpu.matmul %41, %41, %cst_27 {dimension_numbers = #tpu.dot_dimension_numbers<[2], [2], [1], [1], [0, 0, 0, 1, 1, 1], [0], [0]>} : vector<1x8x8xf32>, vector<1x8x8xf32>, vector<1x8x8xf32> -> vector<1x8x8xf32>
    "tpu.trace_stop"() : () -> ()
    %43 = vector.shape_cast %3 : vector<8x8xf32> to vector<1x8x8xf32>
    %44 = arith.mulf %42, %43 : vector<1x8x8xf32>
    %cst_28 = arith.constant 0.000000e+00 : f32
    %45 = vector.broadcast %cst_28 : f32 to vector<1x8x8xf32>
    %46 = arith.cmpf oeq, %44, %45 : vector<1x8x8xf32>
    %cst_29 = arith.constant -1.000000e+16 : f32
    %47 = vector.broadcast %cst_29 : f32 to vector<1x8x8xf32>
    %48 = arith.select %46, %47, %44 : vector<1x8x8xi1>, vector<1x8x8xf32>
    %cst_30 = arith.constant dense<0xFF800000> : vector<1x8xf32>
    %49 = vector.multi_reduction <maximumf>, %48, %cst_30 [2] : vector<1x8x8xf32> to vector<1x8xf32>
    %50 = vector.shape_cast %49 : vector<1x8xf32> to vector<1x8x1xf32>
    %51 = vector.broadcast %50 : vector<1x8x1xf32> to vector<1x8x8xf32>
    %52 = arith.subf %48, %51 : vector<1x8x8xf32>
    %53 = math.exp %52 : vector<1x8x8xf32>
    %cst_31 = arith.constant dense<0.000000e+00> : vector<1x8xf32>
    %54 = vector.multi_reduction <add>, %53, %cst_31 [2] : vector<1x8x8xf32> to vector<1x8xf32>
    %55 = vector.shape_cast %54 : vector<1x8xf32> to vector<1x8x1xf32>
    %56 = vector.broadcast %55 : vector<1x8x1xf32> to vector<1x8x8xf32>
    %57 = arith.divf %53, %56 : vector<1x8x8xf32>
    "tpu.trace_start"() <{level = 10 : i32, message = "gnm,gmd->gnd"}> : () -> ()
    %cst_32 = arith.constant dense<0.000000e+00> : vector<1x8x8xf32>
    %58 = tpu.matmul %57, %41, %cst_32 {dimension_numbers = #tpu.dot_dimension_numbers<[2], [1], [1], [2], [0, 0, 0, 1, 1, 2], [0], [0]>} : vector<1x8x8xf32>, vector<1x8x8xf32>, vector<1x8x8xf32> -> vector<1x8x8xf32>
    "tpu.trace_stop"() : () -> ()
    %c0_33 = arith.constant 0 : index
    %c0_34 = arith.constant 0 : index
    %c0_35 = arith.constant 0 : index
    %c0_36 = arith.constant 0 : index
    %59 = vector.load %arg7[%c0_33, %c0_34, %c0_35, %c0_36] : memref<1x1x1x8xf32, #tpu.memory_space<vmem>>, vector<1x1x1x8xf32>
    %60 = vector.shape_cast %59 : vector<1x1x1x8xf32> to vector<1x1x8xf32>
    %61 = vector.broadcast %60 : vector<1x1x8xf32> to vector<1x8x8xf32>
    %62 = arith.addf %58, %61 : vector<1x8x8xf32>
    %cst_37 = arith.constant 0.000000e+00 : f32
    %63 = vector.broadcast %cst_37 : f32 to vector<1x8x8xf32>
    %64 = arith.maximumf %62, %63 : vector<1x8x8xf32>
    %c0_38 = arith.constant 0 : index
    %c0_39 = arith.constant 0 : index
    %65 = vector.load %arg11[%c0_38, %c0_39] : memref<8x8xf32, #tpu.memory_space<vmem>>, vector<8x8xf32>
    %66 = vector.shape_cast %64 : vector<1x8x8xf32> to vector<8x8xf32>
    %c0_40 = arith.constant 0 : index
    %c0_41 = arith.constant 0 : index
    %c0_42 = arith.constant 0 : index
    %67 = vector.load %arg8[%c0_40, %c0_41, %c0_42] : memref<1x8x8xf32, #tpu.memory_space<vmem>>, vector<1x8x8xf32>
    %68 = vector.shape_cast %67 : vector<1x8x8xf32> to vector<8x8xf32>
    %cst_43 = arith.constant dense<0.000000e+00> : vector<8x8xf32>
    %69 = tpu.matmul %66, %68, %cst_43 {dimension_numbers = #tpu.dot_dimension_numbers<[1], [0], [0], [1], [0, 0, 1, 1], [], []>} : vector<8x8xf32>, vector<8x8xf32>, vector<8x8xf32> -> vector<8x8xf32>
    %70 = arith.addf %65, %69 : vector<8x8xf32>
    %c0_44 = arith.constant 0 : index
    %c0_45 = arith.constant 0 : index
    %71 = vector.load %arg11[%c0_44, %c0_45] : memref<8x8xf32, #tpu.memory_space<vmem>>, vector<8x8xf32>
    tpu.vector_store %arg11[%c0_44, %c0_45], %70 {strides = array<i32>} : memref<8x8xf32, #tpu.memory_space<vmem>>, vector<8x8xf32>,
    %c2_i32 = arith.constant 2 : i32
    %72 = arith.cmpi eq, %arg1, %c2_i32 : i32
    %73 = arith.extui %72 : i1 to i32
    %c0_i32_46 = arith.constant 0 : i32
    %74 = arith.cmpi ne, %73, %c0_i32_46 : i32
    scf.if %74 {
      %c0_47 = arith.constant 0 : index
      %c0_48 = arith.constant 0 : index
      %75 = vector.load %arg11[%c0_47, %c0_48] : memref<8x8xf32, #tpu.memory_space<vmem>>, vector<8x8xf32>
      %76 = vector.shape_cast %75 : vector<8x8xf32> to vector<1x8x8xf32>
      "tpu.trace_start"() <{level = 10 : i32, message = "gnd,gmd->gnm"}> : () -> ()
      %cst_49 = arith.constant dense<0.000000e+00> : vector<1x8x8xf32>
      %77 = tpu.matmul %76, %76, %cst_49 {dimension_numbers = #tpu.dot_dimension_numbers<[2], [2], [1], [1], [0, 0, 0, 1, 1, 1], [0], [0]>} : vector<1x8x8xf32>, vector<1x8x8xf32>, vector<1x8x8xf32> -> vector<1x8x8xf32>
      "tpu.trace_stop"() : () -> ()
      %78 = vector.shape_cast %3 : vector<8x8xf32> to vector<1x8x8xf32>
      %79 = arith.mulf %77, %78 : vector<1x8x8xf32>
      %cst_50 = arith.constant 0.000000e+00 : f32
      %80 = vector.broadcast %cst_50 : f32 to vector<1x8x8xf32>
      %81 = arith.cmpf oeq, %79, %80 : vector<1x8x8xf32>
      %cst_51 = arith.constant -1.000000e+16 : f32
      %82 = vector.broadcast %cst_51 : f32 to vector<1x8x8xf32>
      %83 = arith.select %81, %82, %79 : vector<1x8x8xi1>, vector<1x8x8xf32>
      %cst_52 = arith.constant dense<0xFF800000> : vector<1x8xf32>
      %84 = vector.multi_reduction <maximumf>, %83, %cst_52 [2] : vector<1x8x8xf32> to vector<1x8xf32>
      %85 = vector.shape_cast %84 : vector<1x8xf32> to vector<1x8x1xf32>
      %86 = vector.broadcast %85 : vector<1x8x1xf32> to vector<1x8x8xf32>
      %87 = arith.subf %83, %86 : vector<1x8x8xf32>
      %88 = math.exp %87 : vector<1x8x8xf32>
      %cst_53 = arith.constant dense<0.000000e+00> : vector<1x8xf32>
      %89 = vector.multi_reduction <add>, %88, %cst_53 [2] : vector<1x8x8xf32> to vector<1x8xf32>
      %90 = vector.shape_cast %89 : vector<1x8xf32> to vector<1x8x1xf32>
      %91 = vector.broadcast %90 : vector<1x8x1xf32> to vector<1x8x8xf32>
      %92 = arith.divf %88, %91 : vector<1x8x8xf32>
      "tpu.trace_start"() <{level = 10 : i32, message = "gnm,gmd->gnd"}> : () -> ()
      %cst_54 = arith.constant dense<0.000000e+00> : vector<1x8x8xf32>
      %93 = tpu.matmul %92, %76, %cst_54 {dimension_numbers = #tpu.dot_dimension_numbers<[2], [1], [1], [2], [0, 0, 0, 1, 1, 2], [0], [0]>} : vector<1x8x8xf32>, vector<1x8x8xf32>, vector<1x8x8xf32> -> vector<1x8x8xf32>
      "tpu.trace_stop"() : () -> ()
      %c0_55 = arith.constant 0 : index
      %c0_56 = arith.constant 0 : index
      %c0_57 = arith.constant 0 : index
      %94 = vector.load %arg9[%c0_55, %c0_56, %c0_57] : memref<1x1x8xf32, #tpu.memory_space<vmem>>, vector<1x1x8xf32>
      %95 = vector.broadcast %94 : vector<1x1x8xf32> to vector<1x8x8xf32>
      %96 = arith.addf %93, %95 : vector<1x8x8xf32>
      %c0_58 = arith.constant 0 : index
      %c0_59 = arith.constant 0 : index
      %c0_60 = arith.constant 0 : index
      %97 = vector.load %arg10[%c0_58, %c0_59, %c0_60] : memref<1x8x8xf32, #tpu.memory_space<vmem>>, vector<1x8x8xf32>
      tpu.vector_store %arg10[%c0_58, %c0_59, %c0_60], %96 {strides = array<i32>} : memref<1x8x8xf32, #tpu.memory_space<vmem>>, vector<1x8x8xf32>,
    } else {
    }
    return
  }
  func.func @transform_0(%arg0: i32, %arg1: i32) -> (i32, i32, i32, i32) {
    %c0_i32 = arith.constant 0 : i32
    %c0_i32_0 = arith.constant 0 : i32
    %c0_i32_1 = arith.constant 0 : i32
    return %arg0, %arg1, %c0_i32, %c0_i32_0 : i32, i32, i32, i32
  }
  func.func @transform_1(%arg0: i32, %arg1: i32) -> (i32, i32) {
    %c0_i32 = arith.constant 0 : i32
    %c0_i32_0 = arith.constant 0 : i32
    %c0_i32_1 = arith.constant 0 : i32
    return %c0_i32, %c0_i32_0 : i32, i32
  }
  func.func @transform_2(%arg0: i32, %arg1: i32) -> (i32, i32, i32, i32) {
    %c0_i32 = arith.constant 0 : i32
    %c0_i32_0 = arith.constant 0 : i32
    %c0_i32_1 = arith.constant 0 : i32
    %c0_i32_2 = arith.constant 0 : i32
    return %arg1, %c0_i32, %c0_i32_0, %c0_i32_1 : i32, i32, i32, i32
  }
  func.func @transform_3(%arg0: i32, %arg1: i32) -> (i32, i32, i32, i32) {
    %c0_i32 = arith.constant 0 : i32
    %c0_i32_0 = arith.constant 0 : i32
    %c0_i32_1 = arith.constant 0 : i32
    %c0_i32_2 = arith.constant 0 : i32
    return %arg1, %c0_i32, %c0_i32_0, %c0_i32_1 : i32, i32, i32, i32
  }
  func.func @transform_4(%arg0: i32, %arg1: i32) -> (i32, i32, i32, i32) {
    %c0_i32 = arith.constant 0 : i32
    %c0_i32_0 = arith.constant 0 : i32
    %c0_i32_1 = arith.constant 0 : i32
    %c0_i32_2 = arith.constant 0 : i32
    return %arg1, %c0_i32, %c0_i32_0, %c0_i32_1 : i32, i32, i32, i32
  }
  func.func @transform_5(%arg0: i32, %arg1: i32) -> (i32, i32, i32, i32) {
    %c0_i32 = arith.constant 0 : i32
    %c0_i32_0 = arith.constant 0 : i32
    %c0_i32_1 = arith.constant 0 : i32
    %c0_i32_2 = arith.constant 0 : i32
    return %arg1, %c0_i32, %c0_i32_0, %c0_i32_1 : i32, i32, i32, i32
  }
  func.func @transform_6(%arg0: i32, %arg1: i32) -> (i32, i32, i32) {
    %c0_i32 = arith.constant 0 : i32
    %c0_i32_0 = arith.constant 0 : i32
    %c0_i32_1 = arith.constant 0 : i32
    return %arg1, %c0_i32, %c0_i32_0 : i32, i32, i32
  }
  func.func @transform_7(%arg0: i32, %arg1: i32) -> (i32, i32, i32) {
    %c0_i32 = arith.constant 0 : i32
    %c0_i32_0 = arith.constant 0 : i32
    %c0_i32_1 = arith.constant 0 : i32
    %c0_i32_2 = arith.constant 0 : i32
    return %c0_i32, %c0_i32_0, %c0_i32_1 : i32, i32, i32
  }
  func.func @transform_8(%arg0: i32, %arg1: i32) -> (i32, i32, i32) {
    %c0_i32 = arith.constant 0 : i32
    %c0_i32_0 = arith.constant 0 : i32
    %c0_i32_1 = arith.constant 0 : i32
    return %arg0, %c0_i32, %c0_i32_0 : i32, i32, i32
  }
}

</mosaic_0001>

<bundles_post_ra>
// kernel: tpu_custom_call.1
= control target key start
LH: loop header
LB: loop body
LE: loop exit
PB: predicated region body
PF: predicated region fallthrough
CT: control target
= control target key end

     0   :  { %s2467_s0 = inlined_call_operand.vmem [shape: f32[2,3,8,4], index: 0, kind: input, shape index: {}]   ;;  %s2468_s1 = inlined_call_operand.vmem [shape: f32[8,8], index: 1, kind: input, shape index: {}]   ;;  %s2469_s2 = inlined_call_operand.vmem [shape: f32[3,2,4,8], index: 2, kind: input, shape index: {}]   ;;  %s2470_s3 = inlined_call_operand.vmem [shape: f32[3,2,1,8], index: 3, kind: input, shape index: {}]   ;;  %s2471_s4 = inlined_call_operand.vmem [shape: f32[3,2,8,8], index: 4, kind: input, shape index: {}]   ;;  %s2472_s5 = inlined_call_operand.vmem [shape: f32[3,1,1,8], index: 5, kind: input, shape index: {}]   ;;  %s2473_s6 = inlined_call_operand.hbm [shape: f32[3,8,8], index: 6, kind: input, shape index: {}]   ;;  %s2474_s7 = inlined_call_operand.vmem [shape: f32[1,1,8], index: 7, kind: input, shape index: {}]   ;;  %s2475_s8 = inlined_call_operand.hbm [shape: f32[2,8,8], index: 8, kind: output, shape index: {}]  }
   0x1   :  { %2493 = sst [smem:[#allocation23_spill]] %s2473_s6 }
   0x2   :  { %2494 = sst [smem:[#allocation24_spill]] %s2475_s8 }
   0x3   :  { %13 = vsyncpa [#allocation4], 0 }
   0x4   :  { %15 = vsyncpa [#allocation4 + $0x1], 0 }
   0x5   :  { %16 = vsyncpa [#allocation5], 0 }
   0x6   :  { %18 = vsyncpa [#allocation5 + $0x1], 0  ;;  %s2127_s27 = smov 0   ;;  %s2129_s28 = smov 0  }
   0x7   :  { %s2131_s29 = smov 0   ;;  %s2133_s30 = smov 0  }
   0x8   :  { %s2135_s9 = smov 0   ;;  %s2137_s10 = smov 0  }
   0x9   :  { %s2139_s11 = smov 0   ;;  %s2141_s12 = smov 0  }
   0xa   :  { %s2143_s13 = smov 0   ;;  %s2145_s14 = smov 0  }
   0xb   :  { %s2147_s15 = smov 0  }
   0xc LB: > { %2495 = sst [smem:[#allocation9_spill]] %s2033_s27  ;;  %s1660_s16 = sadd.s32 4294967295, %s2073_s15   ;;  %s2073_s15 = sphi %s2147_s15, %s24_s15   ;;  %s2069_s14 = sphi %s2145_s14, %s2536_s14   ;;  %s2065_s13 = sphi %s2143_s13, %s2535_s13   ;;  %s2061_s12 = sphi %s2141_s12, %s2534_s12   ;;  %s2057_s11 = sphi %s2139_s11, %s2533_s11   ;;  %s2053_s10 = sphi %s2137_s10, %s2532_s10   ;;  %s2049_s9 = sphi %s2135_s9, %s2531_s9   ;;  %s2045_s30 = sphi %s2133_s30, %s2530_s30   ;;  %s2041_s29 = sphi %s2131_s29, %s2529_s29   ;;  %s2037_s28 = sphi %s2129_s28, %s2528_s28   ;;  %s2033_s27 = sphi %s2127_s27, %s2527_s27  }
   0xd   : > { %2496 = sst [smem:[#allocation10_spill]] %s2037_s28  ;;  %s1661_s17 = sadd.s32 4294967294, %s2073_s15  }
   0xe   : > { %2497 = sst [smem:[#allocation11_spill]] %s2041_s29  ;;  %s33_s18 = sadd.s32 1, %s2065_s13 }
   0xf   : > { %2498 = sst [smem:[#allocation12_spill]] %s2049_s9  ;;  %s36_s19 = sadd.s32 1, %s2069_s14 }
  0x10   : > { %2499 = sst [smem:[#allocation13_spill]] %s2053_s10  ;;  %p34_p0 = scmp.ge.s32.totalorder %s33_s18, 3 }
  0x11   : > { %2500 = sst [smem:[#allocation14_spill]] %s2065_s13  ;;  %s196_s20 = sadd.s32 1, %s2053_s10 }
  0x12   : > { %2501 = sst [smem:[#allocation15_spill]] %s2069_s14  ;;  %p203_p1 = scmp.ne.s32.totalorder %s2053_s10, %s2049_s9 }
  0x13   : > { %2502 = sst [smem:[#allocation16_spill]] %s2073_s15  ;;  %p204_p2 = scmp.eq.s32.totalorder %s2073_s15, 0 }
  0x14   : > { %s2538_s18 = smov (%p34_p0, %s33_s18), 0  ;;  %s2540_s19 = smov (!%p34_p0, %s36_s19), %s2069_s14 }
  0x15   : > { %2503 = sst [smem:[#allocation17_spill]] %s2538_s18  ;;  %s193_s21 = ssub.s32 %s2065_s13, %s2538_s18 }
  0x16   : > { %p2193_p3 = por %p204_p2, %p203_p1  ;;  %p38_p4 = scmp.ge.s32.totalorder %s2540_s19, 2 }
  0x17   : > { %p194_p5 = scmp.eq.s32.totalorder %s193_s21, 0  ;;  %p209_p6 = scmp.ne.s32.totalorder %s2049_s9, %s2045_s30 }
  0x18   : > { %p210_p7 = scmp.eq.s32.totalorder %s1660_s16, 0  ;;  %s2542_s19 = smov (%p38_p4, %s2540_s19), 0 }
  0x19   : > { %2505 = sst [smem:[#allocation18_spill]] %s2542_s19  ;;  %s240_s25 = ssub.s32 %s2069_s14, %s2542_s19 }
  0x1a   : > { %s2201_s23 = scalar_select %p194_p5, %s2053_s10, %s196_s20  }
  0x1b   : > { %p2203_p8 = por %p210_p7, %p209_p6  ;;  %p241_p9 = scmp.eq.s32.totalorder %s240_s25, 0 }
  0x1c   : > { %2506 = sst [smem:[#allocation19_spill]] %s2201_s23  ;;  %s243_s26 = sadd.s32 1, %s2041_s29 }
  0x1d   : > { %p253_p10 = scmp.ne.s32.totalorder %s2041_s29, %s2037_s28  ;;  %p254_p11 = scmp.eq.s32.totalorder %s1660_s16, 5 }
  0x1e   : > { %s2213_s30 = scalar_select %p241_p9, %s2041_s29, %s243_s26  }
  0x1f   : > { %p2215_p12 = por %p254_p11, %p253_p10  ;;  %p259_p13 = scmp.ne.s32.totalorder %s2037_s28, %s2033_s27 }
  0x20   : > { %2508 = sst [smem:[#allocation20_spill]] %s2213_s30  ;;  %p260_p0 = scmp.eq.s32.totalorder %s1661_s17, 5 }
  0x21   : > { %s2509_s21 = scalar_select %p2215_p12, 1, 0 }
  0x22   : > { %p1810_p1 = scmp.lt.s32.totalorder %s2073_s15, 6  ;;  %s326_s20 = sand.u32 1, %s2053_s10  }
  0x23   : > { %2510 = sst [smem:[#allocation21_spill]] %s2509_s21  ;;  %p2223_p2 = por %p260_p0, %p259_p13 }
  0x24   : > { %s1664_s25 = sshll.u32 %s326_s20, 3  ;;  %s1665_s19 = sshll.u32 %s2065_s13, 7 }
  0x25   : > { %s2511_s18 = scalar_select %p2223_p2, 1, 0 }
  0x26   : > { %s2513_s6 = sld [smem:[#allocation23_spill]]  ;;  %s330_s26 = scalar_lea.vmem [#allocation3], %s1664_s25 }
  0x27   : > { %2512 = sst [smem:[#allocation22_spill]] %s2511_s18  ;;  %s337_s30 = sshll.u32 %s330_s26, 4  ;;  %s2239_s30 = int_to_ptr.vmem [resolvable:$true] %s337_s30 }
  0x28   : > { %p2235_p4 = pnand %p1810_p1, %p2193_p3  ;;  %s327_s14 = scalar_lea.sflag [#allocation4], %s326_s20 }
  0x2a   : > { %p1923_p9 = pneg %p2235_p4 }
  0x2c   : > { %s2231_s16 = scalar_lea.hbm %s2513_s6, %s1665_s19  ;;  %s1926_s25 = scalar_lea.hbm %s2513_s6, 384 }
  0x2d   : > { %s1921_s19 = scalar_lea.hbm %s2231_s16, 128  ;;  %p1927_p3 = scmp.lt.u32.totalorder %s2231_s16, %s2513_s6 }
  0x2e   : > { %p1922_p7 = scmp.ne.s32.totalorder %s2231_s16, %s1921_s19  ;;  %p1928_p13 = scmp.lt.u32.totalorder %s1926_s25, %s1921_s19 }
  0x2f   : > { %p1930_p1 = scmp.lt.u32.totalorder %s1921_s19, %s2231_s16 }
  0x30   : > { %p1924_p10 = pnand %p1923_p9, %p1922_p7  ;;  %p1929_p0 = por %p1928_p13, %p1927_p3 }
  0x32   : > { %p1925_p11 = pneg %p1924_p10  ;;  %p1931_p5 = por %p1930_p1, %p1929_p0 }
  0x34   : > { %p1932_p6 = pnand %p1931_p5, %p1925_p11 }
  0x36   : > { %1935 = shalt.err (!%p1932_p6)
}
  0x37   : > { %s1936_s20 = scalar_lea.vmem %s2239_s30, 128  ;;  %s2075_s22 = smov [#allocation3]  }
  0x38   : > { %p1937_p7 = scmp.ne.s32.totalorder %s2239_s30, %s1936_s20  ;;  %s1941_s23 = sshll.u32 %s2075_s22, 4  ;;  %s1942_s23 = int_to_ptr.vmem [resolvable:$false] %s1941_s23 }
  0x39   : > { %s1943_s13 = scalar_lea.vmem %s1942_s23, 256  ;;  %p1944_p12 = scmp.lt.s32.totalorder %s2239_s30, %s1942_s23 }
  0x3a   : > { %p1939_p10 = pnand %p1937_p7, %p1923_p9  ;;  %p1945_p3 = scmp.lt.s32.totalorder %s1943_s13, %s1936_s20 }
  0x3c   : > { %p1940_p2 = pneg %p1939_p10  ;;  %p1946_p13 = por %p1945_p3, %p1944_p12 }
  0x3e   : > { %p1947_p0 = pnand %p1946_p13, %p1940_p2 }
  0x40   : > { %1950 = shalt.err (!%p1947_p0)
}
  0x41   : > { %1805 = dma.hbm_to_vmem [thread:$0]  (!%p2235_p4), %s2231_s16, 128, %s2239_s30, %s327_s14  }
  0x42   : > { %p2515_p5 = scmp.lt.s32.totalorder %s2073_s15, 7  ;;  %p2516_p6 = scmp.ge.s32.totalorder %s2073_s15, 1 }
  0x44   : > { %p343_p9 = pnand %p2516_p6, %p2515_p5 }
  0x45   : > { %s348_s19 = sand.u32 (!%p343_p9), 1, %s2049_s9  }
  0x46   : > { %346 = sbr.rel (%p343_p9) target bundleno = 3025 (0xbd1), region = 52  ;;  %s2273_s25 = sshll.u32 (!%p343_p9), %s348_s19, 3 }
  0x47   : > { %s349_s26 = scalar_lea.sflag (!%p343_p9), [#allocation4], %s348_s19 }
  0x4d   : > { %2024 = dma.done.wait (%p2203_p8), %s349_s26, 128  }
  0x4e   : > { %2026 = vsyncadd (%p2203_p8), %s349_s26, 4294967168  ;;  %s2481_s30 = sand.u32 1, %s2037_s28   ;;  %p410_p12 = scmp.lt.s32.totalorder %s2061_s12, 1 }
  0x4f   : > { %s2284_s16 = sshll.u32 %s2481_s30, 3  ;;  %p412_p2 = scmp.lt.s32.totalorder %s2057_s11, 2 }
  0x50   : > { %s411_s17 = scalar_select %p410_p12, %s2061_s12, 1 }
  0x51   : > { %s2289_s14 = scalar_select %p412_p2, %s2057_s11, 2 }
  0x52   : > { %s1797_s24 = smul.u32 3, %s411_s17  ;;  %p1675_p8 = scmp.ne.s32.totalorder %s2057_s11, 0 }
  0x53   : > { %s1704_s22 = sshll.u32 %s2289_s14, 3  ;;  %s1672_s23 = sshll.u32 %s2289_s14, 1  ;;  %vm439_vm0 = vcmask (!%p1675_p8), 64512   ;;  %v2076_v0 = vmov (!%p1675_p8), 0.0  }
  0x54   : > { %s415_s13 = sadd.s32 %s1797_s24, %s2289_s14  ;;  %s422_s20 = scalar_lea.vmem %s2469_s2, %s1704_s22  ;;  %440 = vst.msk [vmem:[#allocation2] sm:$0xff] (!%p1675_p8), %vm439_vm0, %v2076_v0 }
  0x55   : > { %s1669_s30 = sshll.u32 %s415_s13, 3  ;;  %s2300_s9 = scalar_lea.vmem %s2470_s3, %s1672_s23 }
  0x56   : > { %s417_s27 = scalar_lea.vmem %s2467_s0, %s1669_s30  ;;  %s1705_s15 = sshll.u32 %s2289_s14, 4 }
  0x57   : > { %s2309_s21 = scalar_lea.vmem %s2471_s4, %s1705_s15  ;;  %s434_s22 = scalar_lea.vmem %s2472_s5, %s2289_s14 }
  0x58   : > { %s409_s13 = scalar_lea.vmem [#allocation6], %s2284_s16  ;;  %438 = sbr.rel (%p1675_p8) target bundleno = 95 (0x5f), region = 60 }
  0x5f PF: > { %v443_v1 = vld [vmem:[%s422_s20] sm:$0xf]  ;;  %vm449_vm1 = vcmask 1043456   ;;  %v2077_v2 = vmov 0.0   ;;  %v444_v3 = vld [vmem:[%s422_s20 + $0x4] sm:$0xf] }
  0x60   : > { %1732 = vmatprep.subr.mxu0 %v2077_v2  ;;  %1737 = vmatprep.subr.mxu1 %v2077_v2  ;;  %v442_v4 = vld [vmem:[%s417_s27] sm:$0xff]  ;;  %vm445_vm2 = vcmask 31744   ;;  %vm2078_vm3 = vmmov 0   ;;  %vm596_vm4 = vcmask 64512   ;;  %v934_v37 = vld [vmem:[%s2309_s21 + $0x8] sm:$0xff]  ;;  %s2517_s27 = scalar_lea.vmem [#allocation3], %s2273_s25 }
  0x61   : > { %1733 = vmatpush3.msk.msra.mxu0 %vm449_vm1, %v443_v1  ;;  %1734 = vmatprep.mubr.msk.f32.mxu0 %vm2078_vm3, %v2077_v2  ;;  %v2344_v9 = vld [vmem:[%s2468_s1] sm:$0xff]  ;;  %p1695_p4 = scmp.ne.s32.totalorder %s2057_s11, 2 }
  0x62   : > { %1738 = vmatpush3.msk.msra.mxu1 %vm449_vm1, %v444_v3  ;;  %1739 = vmatprep.mubr.msk.f32.mxu1 %vm2078_vm3, %v2077_v2  ;;  %v933_v36 = vld [vmem:[%s2309_s21] sm:$0xff]  ;;  %vm2080_vm8 = vmmov (!%p1695_p4), 0  }
  0x63   : > { %1735 = vmatmul.mubr.msk.f32.vlgmr.msra.gmra.mrb[0].mxu0 %vm445_vm2, %v442_v4  ;;  %1740 = vmatmul.mubr.msk.f32.vlgmr.msra.gmra.mrb[0].mxu1 %vm445_vm2, %v442_v4  ;;  %v1684_v38 = vld [vmem:[%s2300_s9] ss:$0 sm:$0xff]  ;;  %v1685_v42 = vld [vmem:[%s2300_s9 + $0x1] ss:$0 sm:$0xff] }
  0x64   : > { %1742 = vmatprep.subr.mxu0 %v2077_v2  ;;  %1747 = vmatprep.subr.mxu1 %v2077_v2  ;;  %v1253_v4 = vld [vmem:[%s2517_s27] sm:$0xff] }
  0x65   : > { %1744 = vmatprep.mubr.msk.f32.mxu0 %vm2078_vm3, %v2077_v2  ;;  %1749 = vmatprep.mubr.msk.f32.mxu1 %vm2078_vm3, %v2077_v2 }
 0x136   : > { %v519_v5 = vpop.f32.mrb[0].mxu0  ;;  %v592_v6 = vpop.f32.mrb[0].mxu1 }
 0x137   : > { %v1736_v7 = vpop.f32.mrb[1].mxu0  ;;  %1743 = vmatpush3.xpose.msk.msra.mxu0 %vm596_vm4, %v519_v5  ;;  %1748 = vmatpush3.xpose.msk.msra.mxu1 %vm596_vm4, %v592_v6  ;;  %v1741_v8 = vpop.f32.mrb[1].mxu1 }
 0x138   : > { %1752 = vmatprep.subr.mxu0 %v2077_v2  ;;  %1757 = vmatprep.subr.mxu1 %v2077_v2 }
 0x13a   : > { %1745 = vmatmul.mubr.msk.f32.vlgmr.msra.gmra.mrb[2].mxu0 %vm596_vm4, %v519_v5  ;;  %1750 = vmatmul.mubr.msk.f32.vlgmr.msra.gmra.mrb[2].mxu1 %vm596_vm4, %v592_v6 }
 0x13b   : > { %1753 = vmatpush3.msra.mxu0 %v519_v5  ;;  %1758 = vmatpush3.msra.mxu1 %v592_v6  ;;  %v1692_v5 = vld [vmem:[%s434_s22] ss:$0 sm:$0xff] }
 0x13c   : > { %1754 = vmatprep.mubr.msk.f32.mxu0 %vm2078_vm3, %v2077_v2  ;;  %1759 = vmatprep.mubr.msk.f32.mxu1 %vm2078_vm3, %v2077_v2 }
 0x13d   : > { %1762 = vmatprep.subr.mxu0 %v2077_v2  ;;  %1767 = vmatprep.subr.mxu1 %v2077_v2 }
 0x20d   : > { %v666_v10 = vpop.f32.mrb[2].mxu0  ;;  %v739_v11 = vpop.f32.mrb[2].mxu1 }
 0x20e   : > { %v743_v12 = vmul.f32 %v666_v10, %v2344_v9  ;;  %v744_v13 = vmul.f32 %v739_v11, %v2344_v9  ;;  %v1746_v14 = vpop.f32.mrb[3].mxu0  ;;  %v1751_v15 = vpop.f32.mrb[3].mxu1  ;;  %v1252_v11 = vld [vmem:[#allocation2] sm:$0xff] }
 0x210   : > { %vm745_vm5 = vcmp.eq.f32.partialorder %v743_v12, 0.0  ;;  %vm746_vm6 = vcmp.eq.f32.partialorder %v744_v13, 0.0 }
 0x211   : > { %v747_v16 = vsel %vm745_vm5, -1e+16, %v743_v12  ;;  %v748_v18 = vsel %vm746_vm6, -1e+16, %v744_v13 }
 0x212   : > { %v749_v17 = vsel %vm596_vm4, %v747_v16, -inf  ;;  %v752_v19 = vsel %vm596_vm4, %v748_v18, -inf }
 0x213   : > { %750 = vmax.xlane.f32.xlu0 %v749_v17 }
 0x217   : > { %753 = vmax.xlane.f32.xlu0 %v752_v19 }
 0x2a0   : > { %v751_v20 = vpop.xlane.xlu0 %750 }
 0x2a1   : > { %v755_v21 = vsub.f32 %v747_v16, %v751_v20  ;;  %v2079_v16 = vmov (!%p1695_p4), 0.0  }
 0x2a3   : > { %v757_v22 = vmul.f32 1.442695, %v755_v21 }
 0x2a4   : > { %v754_v23 = vpop.xlane.xlu0 %753 }
 0x2a5   : > { %1905 = vpow2.f32 %v757_v22  ;;  %v756_v24 = vsub.f32 %v748_v18, %v754_v23 }
 0x2a7   : > { %v759_v25 = vmul.f32 1.442695, %v756_v24 }
 0x2a9   : > { %1907 = vpow2.f32 %v759_v25 }
 0x2af   : > { %v1906_v26 = vpop.eup %1905 }
 0x2b0   : > { %v761_v27 = vsel %vm596_vm4, %v1906_v26, 0.0 }
 0x2b1   : > { %762 = vadd.xlane.f32.xlu1 %v761_v27 }
 0x2b3   : > { %v1908_v28 = vpop.eup %1907 }
 0x2b4   : > { %v764_v29 = vsel %vm596_vm4, %v1908_v28, 0.0 }
 0x2b5   : > { %765 = vadd.xlane.f32.xlu1 %v764_v29 }
 0x33e   : > { %v763_v30 = vpop.xlane.xlu1 %762 }
 0x33f   : > { %1909 = vrcp.f32 %v763_v30 }
 0x342   : > { %v766_v31 = vpop.xlane.xlu1 %765 }
 0x343   : > { %1911 = vrcp.f32 %v766_v31 }
 0x349   : > { %v1910_v32 = vpop.eup %1909 }
 0x34a   : > { %v768_v33 = vmul.f32 %v1910_v32, %v1906_v26 }
 0x34c   : > { %1755 = vmatmul.mubr.msk.f32.vlgmr.msra.gmra.mrb[4].mxu0 %vm596_vm4, %v768_v33 }
 0x34d   : > { %v1912_v34 = vpop.eup %1911  ;;  %1764 = vmatprep.mubr.msk.f32.mxu0 %vm2078_vm3, %v2077_v2  ;;  %1763 = vmatpush3.msra.mxu0 %v933_v36 }
 0x34e   : > { %v770_v35 = vmul.f32 %v1912_v34, %v1908_v28  ;;  %1772 = vmatprep.subr.mxu0 %v2077_v2 }
 0x350   : > { %1760 = vmatmul.mubr.msk.f32.vlgmr.msra.gmra.mrb[4].mxu1 %vm596_vm4, %v770_v35 }
 0x351   : > { %1769 = vmatprep.mubr.msk.f32.mxu1 %vm2078_vm3, %v2077_v2  ;;  %1768 = vmatpush3.msra.mxu1 %v934_v37 }
 0x352   : > { %1777 = vmatprep.subr.mxu1 %v2077_v2 }
 0x41f   : > { %v854_v39 = vpop.f32.mrb[4].mxu0 }
 0x420   : > { %v855_v40 = vadd.f32 %v1684_v38, %v854_v39  ;;  %v1756_v41 = vpop.f32.mrb[5].mxu0 }
 0x422   : > { %v931_v43 = vmax.f32 %v855_v40, 0.0 }
 0x423   : > { %v927_v44 = vpop.f32.mrb[4].mxu1 }
 0x424   : > { %v928_v45 = vadd.f32 %v1685_v42, %v927_v44  ;;  %v1761_v46 = vpop.f32.mrb[5].mxu1  ;;  %1765 = vmatmul.mubr.msk.f32.vlgmr.msra.gmra.mrb[6].mxu0 %vm596_vm4, %v931_v43 }
 0x425   : > { %1774 = vmatprep.mubr.msk.f32.mxu0 %vm2078_vm3, %v2077_v2 }
 0x426   : > { %v932_v47 = vmax.f32 %v928_v45, 0.0 }
 0x428   : > { %1770 = vmatmul.mubr.msk.f32.vlgmr.msra.gmra.mrb[6].mxu1 %vm596_vm4, %v932_v47 }
 0x429   : > { %1779 = vmatprep.mubr.msk.f32.mxu1 %vm2078_vm3, %v2077_v2 }
 0x4f7   : > { %v1004_v48 = vpop.f32.mrb[6].mxu0 }
 0x4f8   : > { %v1766_v49 = vpop.f32.mrb[7].mxu0  ;;  %v1081_v51 = vsel %vm596_vm4, %v1004_v48, 0.0 }
 0x4fb   : > { %v1077_v50 = vpop.f32.mrb[6].mxu1 }
 0x4fc   : > { %v1082_v52 = vsel %vm596_vm4, %v1077_v50, 0.0  ;;  %v1771_v53 = vpop.f32.mrb[7].mxu1 }
 0x4fd   : > { %v1083_v54 = vadd.f32 %v1082_v52, %v1081_v51 }
 0x4ff   : > { %1773 = vmatpush3.xpose.msk.msra.mxu0 %vm596_vm4, %v1083_v54  ;;  %1778 = vmatpush3.msra.mxu1 %v1083_v54 }
 0x500   : > { %1782 = vmatprep.subr.mxu0 %v2077_v2  ;;  %1792 = vmatprep.subr.mxu1 (!%p1695_p4), %v2079_v16 }
 0x502   : > { %1775 = vmatmul.mubr.msk.f32.vlgmr.msra.gmra.mrb[8].mxu0 %vm596_vm4, %v1083_v54 }
 0x503   : > { %1784 = vmatprep.mubr.msk.f32.mxu0 %vm2078_vm3, %v2077_v2  ;;  %1783 = vmatpush3.msra.mxu0 %v1253_v4 }
 0x504   : > { %1787 = vmatprep.subr.mxu0 (!%p1695_p4), %v2079_v16 }
 0x5d5   : > { %v1153_v55 = vpop.f32.mrb[8].mxu0 }
 0x5d6   : > { %v1157_v56 = vmul.f32 %v1153_v55, %v2344_v9  ;;  %v1776_v57 = vpop.f32.mrb[9].mxu0 }
 0x5d8   : > { %vm1158_vm7 = vcmp.eq.f32.partialorder %v1157_v56, 0.0 }
 0x5d9   : > { %v1159_v58 = vsel %vm1158_vm7, -1e+16, %v1157_v56 }
 0x5da   : > { %v1160_v59 = vsel %vm596_vm4, %v1159_v58, -inf }
 0x5db   : > { %1161 = vmax.xlane.f32.xlu0 %v1160_v59 }
 0x668   : > { %v1162_v60 = vpop.xlane.xlu0 %1161 }
 0x669   : > { %v1163_v61 = vsub.f32 %v1159_v58, %v1162_v60 }
 0x66b   : > { %v1164_v62 = vmul.f32 1.442695, %v1163_v61 }
 0x66d   : > { %1913 = vpow2.f32 %v1164_v62 }
 0x677   : > { %v1914_v63 = vpop.eup %1913 }
 0x678   : > { %v1166_v0 = vsel %vm596_vm4, %v1914_v63, 0.0 }
 0x679   : > { %1167 = vadd.xlane.f32.xlu1 %v1166_v0 }
 0x706   : > { %v1168_v1 = vpop.xlane.xlu1 %1167 }
 0x707   : > { %1915 = vrcp.f32 %v1168_v1 }
 0x711   : > { %v1916_v2 = vpop.eup %1915 }
 0x712   : > { %v1170_v3 = vmul.f32 %v1916_v2, %v1914_v63 }
 0x714   : > { %1780 = vmatmul.mubr.msk.f32.vlgmr.msra.gmra.mrb[8].mxu1 %vm596_vm4, %v1170_v3 }
 0x715   : > { %1794 = vmatprep.mubr.msk.f32.mxu1 (!%p1695_p4), %vm2080_vm8, %v2079_v16 }
 0x7e7   : > { %v1247_v6 = vpop.f32.mrb[8].mxu1 }
 0x7e8   : > { %v1248_v7 = vadd.f32 %v1692_v5, %v1247_v6  ;;  %v1781_v8 = vpop.f32.mrb[9].mxu1 }
 0x7ea   : > { %v1251_v10 = vmax.f32 %v1248_v7, 0.0 }
 0x7ec   : > { %1785 = vmatmul.mubr.msk.f32.vlgmr.msra.gmra.mrb[10].mxu0 %vm596_vm4, %v1251_v10 }
 0x7ed   : > { %1789 = vmatprep.mubr.msk.f32.mxu0 (!%p1695_p4), %vm2080_vm8, %v2079_v16 }
 0x8bc   : > { %1332 = sbr.rel (%p1695_p4) target bundleno = 2998 (0xbb6), region = 64 }
 0x8bf   : > { %v1323_v12 = vpop.f32.mrb[10].mxu0 }
 0x8c0   : > { %v1327_v13 = vadd.f32 %v1323_v12, %v1252_v11  ;;  %v1786_v14 = vpop.f32.mrb[11].mxu0 }
 0x8c2   : > { %1328 = vst.msk [vmem:[#allocation2] sm:$0xff] %vm596_vm4, %v1327_v13 }
 0x8c9   : > { %v1333_v15 = vld [vmem:[#allocation2] sm:$0xff] }
 0x8ca   : > { %1788 = vmatpush3.xpose.msk.msra.mxu0 %vm596_vm4, %v1333_v15  ;;  %1793 = vmatpush3.msra.mxu1 %v1333_v15 }
 0x8cd   : > { %1790 = vmatmul.mubr.msk.f32.vlgmr.msra.gmra.mrb[0].mxu0 %vm596_vm4, %v1333_v15 }
 0x9a0   : > { %v1403_v17 = vpop.f32.mrb[0].mxu0 }
 0x9a1   : > { %v1407_v18 = vmul.f32 %v1403_v17, %v2344_v9  ;;  %v1791_v19 = vpop.f32.mrb[1].mxu0  ;;  %v1698_v9 = vld [vmem:[%s2474_s7] ss:$0 sm:$0xff] }
 0x9a3   : > { %vm1408_vm9 = vcmp.eq.f32.partialorder %v1407_v18, 0.0 }
 0x9a4   : > { %v1409_v20 = vsel %vm1408_vm9, -1e+16, %v1407_v18 }
 0x9a5   : > { %v1410_v21 = vsel %vm596_vm4, %v1409_v20, -inf }
 0x9a6   : > { %1411 = vmax.xlane.f32.xlu0 %v1410_v21 }
 0xa33   : > { %v1412_v22 = vpop.xlane.xlu0 %1411 }
 0xa34   : > { %v1413_v23 = vsub.f32 %v1409_v20, %v1412_v22 }
 0xa36   : > { %v1414_v24 = vmul.f32 1.442695, %v1413_v23 }
 0xa38   : > { %1917 = vpow2.f32 %v1414_v24 }
 0xa42   : > { %v1918_v25 = vpop.eup %1917 }
 0xa43   : > { %v1416_v26 = vsel %vm596_vm4, %v1918_v25, 0.0 }
 0xa44   : > { %1417 = vadd.xlane.f32.xlu0 %v1416_v26 }
 0xad1   : > { %v1418_v27 = vpop.xlane.xlu0 %1417 }
 0xad2   : > { %1919 = vrcp.f32 %v1418_v27 }
 0xadc   : > { %v1920_v28 = vpop.eup %1919 }
 0xadd   : > { %v1420_v29 = vmul.f32 %v1920_v28, %v1918_v25 }
 0xadf   : > { %1795 = vmatmul.mubr.msk.f32.vlgmr.msra.gmra.mrb[0].mxu1 %vm596_vm4, %v1420_v29 }
 0xbb2   : > { %v1497_v30 = vpop.f32.mrb[0].mxu1 }
 0xbb3   : > { %v1498_v31 = vadd.f32 %v1698_v9, %v1497_v30  ;;  %v1796_v32 = vpop.f32.mrb[1].mxu1 }
 0xbb5   : > { %1501 = vst.msk [vmem:[%s409_s13] sm:$0xff] %vm596_vm4, %v1498_v31 }
 0xbb6 PF: > { %s2518_s11 = sld [smem:[#allocation10_spill]]  ;;  %s2519_s15 = sld [smem:[#allocation21_spill]] }
 0xbb7   : > { %s1701_s18 = sshll.u32 %s2061_s12, 7  ;;  %s2520_s20 = sld [smem:[#allocation24_spill]] }
 0xbb8   : > { %s1516_s14 = sshll.u32 %s409_s13, 4  ;;  %s2081_s17 = smov [#allocation6]   ;;  %s1517_s14 = int_to_ptr.vmem [resolvable:$true] %s1516_s14 }
 0xbb9   : > { %s1951_s26 = scalar_lea.vmem %s1517_s14, 128  ;;  %s1955_s24 = sshll.u32 %s2081_s17, 4  ;;  %s1956_s24 = int_to_ptr.vmem [resolvable:$false] %s1955_s24 }
 0xbba   : > { %p1952_p11 = scmp.ne.s32.totalorder %s1517_s14, %s1951_s26  ;;  %s1957_s22 = scalar_lea.vmem %s1956_s24, 256 }
 0xbbb   : > { %p1958_p3 = scmp.lt.s32.totalorder %s1517_s14, %s1956_s24  ;;  %p1959_p13 = scmp.lt.s32.totalorder %s1957_s22, %s1951_s26 }
 0xbbc   : > { %s2521_s23 = sand.u32 1, %s2518_s11   ;;  %p2522_p1 = scmp.ne.s32.totalorder %s2519_s15, 0 }
 0xbbd   : > { %s2407_s30 = scalar_lea.hbm %s2520_s20, %s1701_s18  ;;  %s1503_s19 = scalar_lea.sflag [#allocation5], %s2521_s23 }
 0xbbe   : > { %p1953_p7 = pnand %p1952_p11, %p2522_p1  ;;  %p1960_p0 = por %p1959_p13, %p1958_p3 }
 0xbc0   : > { %p1954_p10 = pneg %p1953_p7 }
 0xbc2   : > { %p1961_p5 = pnand %p1960_p0, %p1954_p10 }
 0xbc4   : > { %1964 = shalt.err (!%p1961_p5)
}
 0xbc5   : > { %s1965_s12 = scalar_lea.hbm %s2407_s30, 128  ;;  %s1969_s6 = scalar_lea.hbm %s2520_s20, 256 }
 0xbc6   : > { %p1966_p6 = scmp.ne.s32.totalorder %s2407_s30, %s1965_s12  ;;  %p1970_p2 = scmp.lt.u32.totalorder %s2407_s30, %s2520_s20 }
 0xbc7   : > { %p1971_p8 = scmp.lt.u32.totalorder %s1969_s6, %s1965_s12  ;;  %p1973_p11 = scmp.lt.u32.totalorder %s1965_s12, %s2407_s30 }
 0xbc8   : > { %p1967_p9 = pnand %p1966_p6, %p2522_p1 }
 0xbc9   : > { %p1972_p4 = por %p1971_p8, %p1970_p2 }
 0xbca   : > { %p1968_p12 = pneg %p1967_p9 }
 0xbcb   : > { %p1974_p7 = por %p1973_p11, %p1972_p4 }
 0xbcd   : > { %p1975_p10 = pnand %p1974_p7, %p1968_p12 }
 0xbcf   : > { %1978 = shalt.err (!%p1975_p10)
}
 0xbd0   : > { %1800 = dma.vmem_to_hbm [thread:$0]  (%p2522_p1), %s1517_s14, 128, %s2407_s30, %s1503_s19  }
 0xbd1 PF: > { %s2523_s28 = sld [smem:[#allocation16_spill]]  ;;  %s2524_s29 = sld [smem:[#allocation9_spill]] }
 0xbd2   : > { %s2525_s9 = sld [smem:[#allocation22_spill]] }
 0xbd7   : > { %p1811_p3 = scmp.ge.s32.totalorder %s2523_s28, 2  ;;  %s1528_s10 = sand.u32 1, %s2524_s29  }
 0xbd8   : > { %p2526_p13 = scmp.ne.s32.totalorder %s2525_s9, 0  ;;  %s1529_s11 = scalar_lea.sflag [#allocation5], %s1528_s10 }
 0xbda   : > { %p1807_p0 = pnand %p1811_p3, %p2526_p13 }
 0xbdc   : > { %2028 = dma.done.wait (!%p1807_p0), %s1529_s11, 128  }
 0xbdd   : > { %2030 = vsyncadd (!%p1807_p0), %s1529_s11, 4294967168  ;;  %s24_s15 = sadd.s32 1, %s2523_s28   ;;  %s2527_s27 = sld [smem:[#allocation10_spill]] }
 0xbde   : > { %p21_p5 = scmp.ge.s32.totalorder %s24_s15, 8   ;;  %s2528_s28 = sld [smem:[#allocation11_spill]] }
 0xbdf   : > { %s2529_s29 = sld [smem:[#allocation20_spill]]  ;;  %s2530_s30 = sld [smem:[#allocation12_spill]] }
 0xbe0   : > { %s2531_s9 = sld [smem:[#allocation13_spill]]  ;;  %s2532_s10 = sld [smem:[#allocation19_spill]] }
 0xbe1   : > { %s2533_s11 = sld [smem:[#allocation14_spill]]  ;;  %s2534_s12 = sld [smem:[#allocation15_spill]] }
 0xbe2   : > { %s2535_s13 = sld [smem:[#allocation17_spill]]  ;;  %s2536_s14 = sld [smem:[#allocation18_spill]] }
 0xbe3   :  { %23 = sbr.rel (!%p21_p5) target bundleno = 12 (0xc), region = 120 }
 0xbea   :  { %1534 = vsyncpa [#allocation4], 1 }
 0xbeb   :  { %1536 = vsyncpa [#allocation4 + $0x1], 1 }
 0xbec   :  { %1537 = vsyncpa [#allocation5], 1 }
 0xbed   :  { %1539 = vsyncpa [#allocation5 + $0x1], 1 }

</bundles_post_ra>
